<compile_context>
chip_gen: v6e
topology: v6e:2x2x1
jax: 0.10.0
libtpu: 0.0.40
codegen_flags: <defaults>
</compile_context>

<pallas_src>
import functools
import inspect

import jax
import jax.numpy as jnp
from jax.experimental import pallas as pl
from jax.experimental.pallas import tpu as pltpu


def _ceil_to(x, m):
    return (x + m - 1) // m * m


def mlp_kernel(x_ref, w1_ref, b1_ref, w2_ref, b2_ref, w3_ref, b3_ref, o_ref):
    # h1 = relu(x @ W1 + b1): MXU matmul with f32 accumulate; bias+relu are VPU
    # work hidden under the MXU.
    h1 = jnp.dot(x_ref[...], w1_ref[...], preferred_element_type=jnp.float32)
    h1 = jnp.maximum(h1 + b1_ref[...], 0.0).astype(w2_ref.dtype)
    # h2 = relu(h1 @ W2 + b2)
    h2 = jnp.dot(h1, w2_ref[...], preferred_element_type=jnp.float32)
    h2 = jnp.maximum(h2 + b2_ref[...], 0.0).astype(w3_ref.dtype)
    # h3 = h2 @ W3 + b3  (no activation)
    h3 = jnp.dot(h2, w3_ref[...], preferred_element_type=jnp.float32)
    o_ref[...] = (h3 + b3_ref[...]).astype(o_ref.dtype)


# Single-buffer grid-invariant operands when the API supports it.
_HAS_PIPELINE_MODE = (
    hasattr(pl, "Buffered")
    and "pipeline_mode" in inspect.signature(pl.BlockSpec).parameters
)


def _resident_spec(shape):
    """BlockSpec for an operand whose block never changes across the grid."""
    if _HAS_PIPELINE_MODE:
        return pl.BlockSpec(shape, lambda i: (0, 0), pipeline_mode=pl.Buffered(1))
    return pl.BlockSpec(shape, lambda i: (0, 0))


def _pick_block_n(N, default=512):
    """Batch tile: big enough to amortize ~0.35 us/step, small enough for >=2 steps."""
    block_n = default
    n8 = _ceil_to(max(N, 1), 8)
    while block_n > 8 and 2 * block_n > n8:
        block_n //= 2
    return block_n


@functools.partial(jax.jit, static_argnames=("block_n", "compute_dtype"))
def _mlp_forward_impl(x, params, *, block_n, compute_dtype):
    out_dtype = x.dtype
    N, in_feats = x.shape
    h_feats = params["w1"].shape[1]
    out_feats = params["w3"].shape[1]

    # Lane-align every feature dim (128) so MXU passes are dense and the output
    # store is an unmasked, lane-dense vst.
    in_p = _ceil_to(in_feats, 128)
    h_p = _ceil_to(h_feats, 128)
    out_p = _ceil_to(out_feats, 128)

    n_pad = _ceil_to(N, block_n)
    grid = (n_pad // block_n,)

    cdt = x.dtype if compute_dtype is None else compute_dtype

    def pad2(a, rows, cols):
        if a.shape == (rows, cols):
            return a
        return jnp.pad(a, ((0, rows - a.shape[0]), (0, cols - a.shape[1])))

    x_p = pad2(x.astype(cdt), n_pad, in_p)
    w1 = pad2(params["w1"].astype(cdt), in_p, h_p)
    w2 = pad2(params["w2"].astype(cdt), h_p, h_p)
    w3 = pad2(params["w3"].astype(cdt), h_p, out_p)
    # Biases stay f32 (added to the f32 accumulator inside the kernel).
    b1 = jnp.pad(params["b1"].astype(jnp.float32), (0, h_p - h_feats)).reshape(1, h_p)
    b2 = jnp.pad(params["b2"].astype(jnp.float32), (0, h_p - h_feats)).reshape(1, h_p)
    b3 = jnp.pad(params["b3"].astype(jnp.float32), (0, out_p - out_feats)).reshape(1, out_p)

    # VMEM budget: x/out tiles double-buffered, weights single-buffered,
    # f32 intermediates h1/h2, small padded biases. Cap at 64 MiB (v7x physical).
    bpe = jnp.dtype(cdt).itemsize
    vmem_bytes = (
        2 * block_n * in_p * bpe                        # x tile (double-buffered)
        + (in_p * h_p + h_p * h_p + h_p * out_p) * bpe  # resident weights
        + (2 * h_p + out_p) * 4 * 8                     # biases (sublane-padded)
        + 2 * block_n * out_p * jnp.dtype(out_dtype).itemsize  # out tile
        + 2 * block_n * h_p * 4                         # h1/h2 f32 intermediates
    )
    vmem_limit = int(min(max(2 * vmem_bytes, 32 * 1024 * 1024), 64 * 1024 * 1024))

    out_padded = pl.pallas_call(
        mlp_kernel,
        out_shape=jax.ShapeDtypeStruct((n_pad, out_p), out_dtype),
        grid_spec=pltpu.PrefetchScalarGridSpec(
            num_scalar_prefetch=0,
            grid=grid,
            in_specs=[
                pl.BlockSpec((block_n, in_p), lambda i: (i, 0)),  # x tile (pipelined)
                _resident_spec((in_p, h_p)),                      # W1 (resident)
                _resident_spec((1, h_p)),                         # b1
                _resident_spec((h_p, h_p)),                       # W2
                _resident_spec((1, h_p)),                         # b2
                _resident_spec((h_p, out_p)),                     # W3
                _resident_spec((1, out_p)),                       # b3
            ],
            out_specs=pl.BlockSpec((block_n, out_p), lambda i: (i, 0)),
        ),
        compiler_params=pltpu.CompilerParams(
            dimension_semantics=("parallel",),
            vmem_limit_bytes=vmem_limit,
        ),
    )(x_p, w1, b1, w2, b2, w3, b3)

    return out_padded[:N, :out_feats]


def mlp_forward(x, params, *, block_n=None, compute_dtype=None):
    """x: (N, in_feats). params: dict w1,b1,w2,b2,w3,b3; weights stored (in, out).

    compute_dtype: optional (e.g. jnp.bfloat16 on v6e/v7x) dtype for x and the
    weights; accumulation stays f32 and the output keeps x's original dtype.
    """
    if block_n is None:
        block_n = _pick_block_n(x.shape[0])
    return _mlp_forward_impl(x, params, block_n=block_n, compute_dtype=compute_dtype)


def init_params(key, in_feats, h_feats, out_feats, dtype=jnp.float32):
    """Deterministic init mimicking nn.Linear (uniform +/- 1/sqrt(fan_in)).
    Weights stored as (in, out) = transpose of the PyTorch layout."""
    ks = jax.random.split(key, 6)

    def linear_init(kw, kb, fan_in, fan_out):
        bound = 1.0 / (fan_in ** 0.5)
        w = jax.random.uniform(kw, (fan_in, fan_out), dtype, -bound, bound)
        b = jax.random.uniform(kb, (fan_out,), dtype, -bound, bound)
        return w, b

    w1, b1 = linear_init(ks[0], ks[1], in_feats, h_feats)
    w2, b2 = linear_init(ks[2], ks[3], h_feats, h_feats)
    w3, b3 = linear_init(ks[4], ks[5], h_feats, out_feats)
    return {"w1": w1, "b1": b1, "w2": w2, "b2": b2, "w3": w3, "b3": b3}


def mlp_reference(x, p):
    h1 = jnp.maximum(x @ p["w1"] + p["b1"], 0.0)
    h2 = jnp.maximum(h1 @ p["w2"] + p["b2"], 0.0)
    return h2 @ p["w3"] + p["b3"]


if __name__ == "__main__":
    key = jax.random.PRNGKey(0)
    in_feats, h_feats, out_feats = 32, 64, 16
    N = 16  # small demo batch of rows

    kx, kp = jax.random.split(key)
    x = jax.random.normal(kx, (N, in_feats), jnp.float32)
    params = init_params(kp, in_feats, h_feats, out_feats)

    ref = mlp_reference(x, params)

    # f32 path (tight check).
    out = jax.block_until_ready(mlp_forward(x, params))
    assert out.shape == (N, out_feats)
    assert jnp.allclose(out, ref, atol=1e-5, rtol=1e-5), "f32 mismatch vs reference"

    # bf16 fast path (v6e/v7x): bf16 activations/weights, f32 accumulate, f32 output.
    out_bf16 = jax.block_until_ready(mlp_forward(x, params, compute_dtype=jnp.bfloat16))
    assert out_bf16.shape == (N, out_feats)
    assert jnp.allclose(out_bf16, ref, atol=1.5e-1, rtol=1e-1), "bf16 mismatch vs reference"

    print("KERNEL_OK")
</pallas_src>

<mosaic_0001>
module attributes {stable_mosaic.version = 11 : i64} {
  func.func @mlp_kernel(%arg0: i32, %arg1: memref<8x128xf32, #tpu.memory_space<vmem>>, %arg2: memref<128x128xf32, #tpu.memory_space<vmem>>, %arg3: memref<1x128xf32, #tpu.memory_space<vmem>>, %arg4: memref<128x128xf32, #tpu.memory_space<vmem>>, %arg5: memref<1x128xf32, #tpu.memory_space<vmem>>, %arg6: memref<128x128xf32, #tpu.memory_space<vmem>>, %arg7: memref<1x128xf32, #tpu.memory_space<vmem>>, %arg8: memref<8x128xf32, #tpu.memory_space<vmem>>) attributes {dimension_semantics = [#tpu.dimension_semantics<parallel>], iteration_bounds = array<i64: 2>, scalar_prefetch = 0 : i64, scratch_operands = 0 : i64, tpu.core_type = #tpu.core_type<tc>, window_params = [{transform_indices = @transform_0, window_bounds = array<i64: 8, 128>}, {pipeline_mode = #tpu.pipeline_mode<synchronous>, transform_indices = @transform_1, window_bounds = array<i64: 128, 128>}, {pipeline_mode = #tpu.pipeline_mode<synchronous>, transform_indices = @transform_2, window_bounds = array<i64: 1, 128>}, {pipeline_mode = #tpu.pipeline_mode<synchronous>, transform_indices = @transform_3, window_bounds = array<i64: 128, 128>}, {pipeline_mode = #tpu.pipeline_mode<synchronous>, transform_indices = @transform_4, window_bounds = array<i64: 1, 128>}, {pipeline_mode = #tpu.pipeline_mode<synchronous>, transform_indices = @transform_5, window_bounds = array<i64: 128, 128>}, {pipeline_mode = #tpu.pipeline_mode<synchronous>, transform_indices = @transform_6, window_bounds = array<i64: 1, 128>}, {transform_indices = @transform_7, window_bounds = array<i64: 8, 128>}]} {
    %c0 = arith.constant 0 : index
    %c0_0 = arith.constant 0 : index
    %0 = vector.load %arg1[%c0, %c0_0] : memref<8x128xf32, #tpu.memory_space<vmem>>, vector<8x128xf32>
    %c0_1 = arith.constant 0 : index
    %c0_2 = arith.constant 0 : index
    %1 = vector.load %arg2[%c0_1, %c0_2] : memref<128x128xf32, #tpu.memory_space<vmem>>, vector<128x128xf32>
    %cst = arith.constant dense<0.000000e+00> : vector<8x128xf32>
    %2 = tpu.matmul %0, %1, %cst {dimension_numbers = #tpu.dot_dimension_numbers<[1], [0], [0], [1], [0, 0, 1, 1], [], []>} : vector<8x128xf32>, vector<128x128xf32>, vector<8x128xf32> -> vector<8x128xf32>
    %c0_3 = arith.constant 0 : index
    %c0_4 = arith.constant 0 : index
    %3 = vector.load %arg3[%c0_3, %c0_4] : memref<1x128xf32, #tpu.memory_space<vmem>>, vector<1x128xf32>
    %4 = vector.broadcast %3 : vector<1x128xf32> to vector<8x128xf32>
    %5 = arith.addf %2, %4 : vector<8x128xf32>
    %cst_5 = arith.constant 0.000000e+00 : f32
    %6 = vector.broadcast %cst_5 : f32 to vector<8x128xf32>
    %7 = arith.maximumf %5, %6 : vector<8x128xf32>
    %c0_6 = arith.constant 0 : index
    %c0_7 = arith.constant 0 : index
    %8 = vector.load %arg4[%c0_6, %c0_7] : memref<128x128xf32, #tpu.memory_space<vmem>>, vector<128x128xf32>
    %cst_8 = arith.constant dense<0.000000e+00> : vector<8x128xf32>
    %9 = tpu.matmul %7, %8, %cst_8 {dimension_numbers = #tpu.dot_dimension_numbers<[1], [0], [0], [1], [0, 0, 1, 1], [], []>} : vector<8x128xf32>, vector<128x128xf32>, vector<8x128xf32> -> vector<8x128xf32>
    %c0_9 = arith.constant 0 : index
    %c0_10 = arith.constant 0 : index
    %10 = vector.load %arg5[%c0_9, %c0_10] : memref<1x128xf32, #tpu.memory_space<vmem>>, vector<1x128xf32>
    %11 = vector.broadcast %10 : vector<1x128xf32> to vector<8x128xf32>
    %12 = arith.addf %9, %11 : vector<8x128xf32>
    %cst_11 = arith.constant 0.000000e+00 : f32
    %13 = vector.broadcast %cst_11 : f32 to vector<8x128xf32>
    %14 = arith.maximumf %12, %13 : vector<8x128xf32>
    %c0_12 = arith.constant 0 : index
    %c0_13 = arith.constant 0 : index
    %15 = vector.load %arg6[%c0_12, %c0_13] : memref<128x128xf32, #tpu.memory_space<vmem>>, vector<128x128xf32>
    %cst_14 = arith.constant dense<0.000000e+00> : vector<8x128xf32>
    %16 = tpu.matmul %14, %15, %cst_14 {dimension_numbers = #tpu.dot_dimension_numbers<[1], [0], [0], [1], [0, 0, 1, 1], [], []>} : vector<8x128xf32>, vector<128x128xf32>, vector<8x128xf32> -> vector<8x128xf32>
    %c0_15 = arith.constant 0 : index
    %c0_16 = arith.constant 0 : index
    %17 = vector.load %arg7[%c0_15, %c0_16] : memref<1x128xf32, #tpu.memory_space<vmem>>, vector<1x128xf32>
    %18 = vector.broadcast %17 : vector<1x128xf32> to vector<8x128xf32>
    %19 = arith.addf %16, %18 : vector<8x128xf32>
    %c0_17 = arith.constant 0 : index
    %c0_18 = arith.constant 0 : index
    %20 = vector.load %arg8[%c0_17, %c0_18] : memref<8x128xf32, #tpu.memory_space<vmem>>, vector<8x128xf32>
    tpu.vector_store %arg8[%c0_17, %c0_18], %19 {strides = array<i32>} : memref<8x128xf32, #tpu.memory_space<vmem>>, vector<8x128xf32>,
    return
  }
  func.func @transform_0(%arg0: i32) -> (i32, i32) {
    %c0_i32 = arith.constant 0 : i32
    %c0_i32_0 = arith.constant 0 : i32
    return %arg0, %c0_i32 : i32, i32
  }
  func.func @transform_1(%arg0: i32) -> (i32, i32) {
    %c0_i32 = arith.constant 0 : i32
    %c0_i32_0 = arith.constant 0 : i32
    %c0_i32_1 = arith.constant 0 : i32
    return %c0_i32, %c0_i32_0 : i32, i32
  }
  func.func @transform_2(%arg0: i32) -> (i32, i32) {
    %c0_i32 = arith.constant 0 : i32
    %c0_i32_0 = arith.constant 0 : i32
    %c0_i32_1 = arith.constant 0 : i32
    return %c0_i32, %c0_i32_0 : i32, i32
  }
  func.func @transform_3(%arg0: i32) -> (i32, i32) {
    %c0_i32 = arith.constant 0 : i32
    %c0_i32_0 = arith.constant 0 : i32
    %c0_i32_1 = arith.constant 0 : i32
    return %c0_i32, %c0_i32_0 : i32, i32
  }
  func.func @transform_4(%arg0: i32) -> (i32, i32) {
    %c0_i32 = arith.constant 0 : i32
    %c0_i32_0 = arith.constant 0 : i32
    %c0_i32_1 = arith.constant 0 : i32
    return %c0_i32, %c0_i32_0 : i32, i32
  }
  func.func @transform_5(%arg0: i32) -> (i32, i32) {
    %c0_i32 = arith.constant 0 : i32
    %c0_i32_0 = arith.constant 0 : i32
    %c0_i32_1 = arith.constant 0 : i32
    return %c0_i32, %c0_i32_0 : i32, i32
  }
  func.func @transform_6(%arg0: i32) -> (i32, i32) {
    %c0_i32 = arith.constant 0 : i32
    %c0_i32_0 = arith.constant 0 : i32
    %c0_i32_1 = arith.constant 0 : i32
    return %c0_i32, %c0_i32_0 : i32, i32
  }
  func.func @transform_7(%arg0: i32) -> (i32, i32) {
    %c0_i32 = arith.constant 0 : i32
    %c0_i32_0 = arith.constant 0 : i32
    return %arg0, %c0_i32 : i32, i32
  }
}

</mosaic_0001>

<bundles_post_ra>
// kernel: _mlp_forward_impl.1
= control target key start
LH: loop header
LB: loop body
LE: loop exit
PB: predicated region body
PF: predicated region fallthrough
CT: control target
= control target key end

     0   :  { %12 = vsyncpa [#allocation3], 0  ;;  %s1245_s0 = inlined_call_operand.vmem [shape: f32[16,128], index: 0, kind: input, shape index: {}]   ;;  %s1246_s1 = inlined_call_operand.vmem [shape: f32[128,128], index: 1, kind: input, shape index: {}]   ;;  %s1247_s2 = inlined_call_operand.vmem [shape: f32[1,128], index: 2, kind: input, shape index: {}]   ;;  %s1248_s3 = inlined_call_operand.vmem [shape: f32[128,128], index: 3, kind: input, shape index: {}]   ;;  %s1249_s4 = inlined_call_operand.vmem [shape: f32[1,128], index: 4, kind: input, shape index: {}]   ;;  %s1250_s5 = inlined_call_operand.vmem [shape: f32[128,128], index: 5, kind: input, shape index: {}]   ;;  %s1251_s6 = inlined_call_operand.vmem [shape: f32[1,128], index: 6, kind: input, shape index: {}]   ;;  %s1252_s7 = inlined_call_operand.hbm [shape: f32[16,128], index: 7, kind: output, shape index: {}]  }
   0x1   :  { %14 = vsyncpa [#allocation3 + $0x1], 0  ;;  %s945_s24 = smov 0   ;;  %s947_s25 = smov 0  }
   0x2   :  { %s949_s26 = smov 0   ;;  %s951_s27 = smov 0  }
   0x3 LB: > { %s966_s28 = sadd.s32 4294967295, %s900_s27   ;;  %s630_s29 = sadd.s32 4294967294, %s900_s27   ;;  %s900_s27 = sphi %s951_s27, %s1258_s27   ;;  %s896_s26 = sphi %s949_s26, %s1257_s26   ;;  %s892_s25 = sphi %s947_s25, %s1256_s25   ;;  %s888_s24 = sphi %s945_s24, %s1255_s24  }
   0x4   : > { %s970_s30 = sadd.s32 1, %s900_s27   ;;  %s179_s8 = sadd.s32 1, %s896_s26 }
   0x5   : > { %s176_s9 = ssub.s32 %s900_s27, %s970_s30  ;;  %p189_p0 = scmp.ne.s32.totalorder %s896_s26, %s892_s25 }
   0x6   : > { %p177_p1 = scmp.eq.s32.totalorder %s176_s9, 0  ;;  %p190_p2 = scmp.eq.s32.totalorder %s966_s28, 1 }
   0x7   : > { %p195_p3 = scmp.ne.s32.totalorder %s892_s25, %s888_s24  ;;  %p196_p4 = scmp.eq.s32.totalorder %s630_s29, 1 }
   0x8   : > { %s981_s10 = scalar_select %p177_p1, %s896_s26, %s179_s8  }
   0x9   : > { %p983_p5 = por %p190_p2, %p189_p0  ;;  %p987_p6 = por %p196_p4, %p195_p3 }
   0xa   : > { %p633_p7 = scmp.ge.s32.totalorder %s900_s27, 1  ;;  %p239_p8 = scmp.lt.s32.totalorder %s900_s27, 3 }
   0xc   : > { %p240_p9 = pnand %p633_p7, %p239_p8 }
   0xd   : > { %p270_p10 = scmp.lt.s32.totalorder (!%p240_p9), %s966_s28, 1  ;;  %s640_s29 = sshll.u32 (!%p240_p9), %s966_s28, 7 }
   0xe   : > { %243 = sbr.rel (%p240_p9) target bundleno = 654 (0x28e), region = 48  ;;  %s904_s18 = smov (!%p240_p9), [#allocation2]  }
  0x13   : > { %v290_v0 = vld [vmem:[%s1246_s1 + $0x78] sm:$0xff]  ;;  %v902_v1 = vmov 0.0   ;;  %v289_v2 = vld [vmem:[%s1246_s1 + $0x70] sm:$0xff]  ;;  %vm903_vm0 = vmmov 0   ;;  %v288_v3 = vld [vmem:[%s1246_s1 + $0x68] sm:$0xff]  ;;  %s271_s8 = scalar_select %p270_p10, %s966_s28, 1 }
  0x14   : > { %694 = vmatprep.subr.mxu0 %v902_v1  ;;  %726 = vmatprep.mubr.msk.f32.mxu0 %vm903_vm0, %v902_v1  ;;  %v287_v4 = vld [vmem:[%s1246_s1 + $0x60] sm:$0xff]  ;;  %v384_v5 = vld [vmem:[%s1248_s3 + $0x78] sm:$0xff]  ;;  %v383_v6 = vld [vmem:[%s1248_s3 + $0x70] sm:$0xff]  ;;  %s844_s28 = sshll.u32 %s904_s18, 4  ;;  %s845_s28 = int_to_ptr.vmem [resolvable:$false] %s844_s28 }
  0x15   : > { %695 = vmatpush3.msra.mxu0 %v290_v0  ;;  %729 = vmatprep.subr.mxu1 %v902_v1  ;;  %v286_v7 = vld [vmem:[%s1246_s1 + $0x58] sm:$0xff]  ;;  %v382_v8 = vld [vmem:[%s1248_s3 + $0x68] sm:$0xff]  ;;  %v285_v9 = vld [vmem:[%s1246_s1 + $0x50] sm:$0xff]  ;;  %s635_s20 = sshll.u32 %s271_s8, 3  ;;  %s846_s19 = scalar_lea.vmem %s845_s28, 256 }
  0x16   : > { %696 = vmatprep.subr.mxu0 %v902_v1  ;;  %761 = vmatprep.mubr.msk.f32.mxu1 %vm903_vm0, %v902_v1  ;;  %v381_v10 = vld [vmem:[%s1248_s3 + $0x60] sm:$0xff]  ;;  %v284_v11 = vld [vmem:[%s1246_s1 + $0x48] sm:$0xff]  ;;  %v380_v12 = vld [vmem:[%s1248_s3 + $0x58] sm:$0xff]  ;;  %s273_s15 = scalar_lea.vmem %s1245_s0, %s635_s20  ;;  %s267_s20 = sand.u32 1, %s892_s25  }
  0x17   : > { %697 = vmatpush3.msra.mxu0 %v289_v2  ;;  %730 = vmatpush3.msra.mxu1 %v384_v5  ;;  %v283_v13 = vld [vmem:[%s1246_s1 + $0x40] sm:$0xff]  ;;  %v379_v14 = vld [vmem:[%s1248_s3 + $0x50] sm:$0xff]  ;;  %v282_v15 = vld [vmem:[%s1246_s1 + $0x38] sm:$0xff]  ;;  %s634_s21 = sshll.u32 %s267_s20, 3  ;;  %s558_s16 = scalar_lea.sflag [#allocation3], %s267_s20 }
  0x18   : > { %698 = vmatprep.subr.mxu0 %v902_v1  ;;  %731 = vmatprep.subr.mxu1 %v902_v1  ;;  %v378_v16 = vld [vmem:[%s1248_s3 + $0x48] sm:$0xff]  ;;  %v281_v17 = vld [vmem:[%s1246_s1 + $0x30] sm:$0xff]  ;;  %v377_v18 = vld [vmem:[%s1248_s3 + $0x40] sm:$0xff]  ;;  %s269_s9 = scalar_lea.vmem [#allocation2], %s634_s21 }
  0x19   : > { %699 = vmatpush3.msra.mxu0 %v288_v3  ;;  %732 = vmatpush3.msra.mxu1 %v383_v6  ;;  %v280_v19 = vld [vmem:[%s1246_s1 + $0x28] sm:$0xff]  ;;  %v376_v20 = vld [vmem:[%s1248_s3 + $0x38] sm:$0xff]  ;;  %v279_v21 = vld [vmem:[%s1246_s1 + $0x20] sm:$0xff]  ;;  %s571_s13 = sshll.u32 %s269_s9, 4  ;;  %s572_s13 = int_to_ptr.vmem [resolvable:$true] %s571_s13 }
  0x1a   : > { %700 = vmatprep.subr.mxu0 %v902_v1  ;;  %733 = vmatprep.subr.mxu1 %v902_v1  ;;  %v375_v22 = vld [vmem:[%s1248_s3 + $0x30] sm:$0xff]  ;;  %v278_v23 = vld [vmem:[%s1246_s1 + $0x18] sm:$0xff]  ;;  %v374_v24 = vld [vmem:[%s1248_s3 + $0x28] sm:$0xff]  ;;  %s840_s17 = scalar_lea.vmem %s572_s13, 128  ;;  %p847_p0 = scmp.lt.s32.totalorder %s572_s13, %s845_s28 }
  0x1b   : > { %701 = vmatpush3.msra.mxu0 %v287_v4  ;;  %734 = vmatpush3.msra.mxu1 %v382_v8  ;;  %v277_v25 = vld [vmem:[%s1246_s1 + $0x10] sm:$0xff]  ;;  %v373_v26 = vld [vmem:[%s1248_s3 + $0x20] sm:$0xff]  ;;  %v276_v27 = vld [vmem:[%s1246_s1 + $0x8] sm:$0xff]  ;;  %p841_p11 = scmp.ne.s32.totalorder %s572_s13, %s840_s17  ;;  %p848_p1 = scmp.lt.s32.totalorder %s846_s19, %s840_s17 }
  0x1c   : > { %702 = vmatprep.subr.mxu0 %v902_v1  ;;  %735 = vmatprep.subr.mxu1 %v902_v1  ;;  %v372_v28 = vld [vmem:[%s1248_s3 + $0x18] sm:$0xff]  ;;  %v275_v29 = vld [vmem:[%s1246_s1] sm:$0xff]  ;;  %v371_v31 = vld [vmem:[%s1248_s3 + $0x10] sm:$0xff] }
  0x1d   : > { %703 = vmatpush3.msra.mxu0 %v286_v7  ;;  %736 = vmatpush3.msra.mxu1 %v381_v10  ;;  %v274_v30 = vld [vmem:[%s273_s15] sm:$0xff]  ;;  %v370_v32 = vld [vmem:[%s1248_s3 + $0x8] sm:$0xff]  ;;  %v478_v34 = vld [vmem:[%s1250_s5 + $0x78] sm:$0xff]  ;;  %s1210_s15 = scalar_lea.hbm %s1252_s7, %s640_s29  ;;  %p842_p12 = pnand %p841_p11, %p983_p5 }
  0x1e   : > { %704 = vmatprep.subr.mxu0 %v902_v1  ;;  %737 = vmatprep.subr.mxu1 %v902_v1  ;;  %v369_v33 = vld [vmem:[%s1248_s3] sm:$0xff]  ;;  %v477_v35 = vld [vmem:[%s1250_s5 + $0x70] sm:$0xff]  ;;  %v476_v36 = vld [vmem:[%s1250_s5 + $0x68] sm:$0xff]  ;;  %p849_p2 = por %p848_p1, %p847_p0 }
  0x1f   : > { %705 = vmatpush3.msra.mxu0 %v285_v9  ;;  %738 = vmatpush3.msra.mxu1 %v380_v12  ;;  %v475_v37 = vld [vmem:[%s1250_s5 + $0x60] sm:$0xff]  ;;  %v474_v38 = vld [vmem:[%s1250_s5 + $0x58] sm:$0xff]  ;;  %v473_v39 = vld [vmem:[%s1250_s5 + $0x50] sm:$0xff]  ;;  %p843_p13 = pneg %p842_p12 }
  0x20   : > { %706 = vmatprep.subr.mxu0 %v902_v1  ;;  %739 = vmatprep.subr.mxu1 %v902_v1  ;;  %v472_v40 = vld [vmem:[%s1250_s5 + $0x48] sm:$0xff]  ;;  %v471_v41 = vld [vmem:[%s1250_s5 + $0x40] sm:$0xff]  ;;  %v470_v42 = vld [vmem:[%s1250_s5 + $0x38] sm:$0xff] }
  0x21   : > { %707 = vmatpush3.msra.mxu0 %v284_v11  ;;  %740 = vmatpush3.msra.mxu1 %v379_v14  ;;  %v469_v43 = vld [vmem:[%s1250_s5 + $0x30] sm:$0xff]  ;;  %v468_v44 = vld [vmem:[%s1250_s5 + $0x28] sm:$0xff]  ;;  %v467_v45 = vld [vmem:[%s1250_s5 + $0x20] sm:$0xff]  ;;  %p850_p3 = pnand %p849_p2, %p843_p13 }
  0x22   : > { %708 = vmatprep.subr.mxu0 %v902_v1  ;;  %741 = vmatprep.subr.mxu1 %v902_v1  ;;  %v466_v46 = vld [vmem:[%s1250_s5 + $0x18] sm:$0xff]  ;;  %v636_v47 = vld [vmem:[%s1247_s2] ss:$0 sm:$0xff]  ;;  %v465_v52 = vld [vmem:[%s1250_s5 + $0x10] sm:$0xff] }
  0x23   : > { %709 = vmatpush3.msra.mxu0 %v283_v13  ;;  %742 = vmatpush3.msra.mxu1 %v378_v16  ;;  %v464_v53 = vld [vmem:[%s1250_s5 + $0x8] sm:$0xff]  ;;  %v463_v54 = vld [vmem:[%s1250_s5] sm:$0xff] }
  0x24   : > { %710 = vmatprep.subr.mxu0 %v902_v1  ;;  %743 = vmatprep.subr.mxu1 %v902_v1  ;;  %v637_v55 = vld [vmem:[%s1249_s4] ss:$0 sm:$0xff] }
  0x25   : > { %711 = vmatpush3.msra.mxu0 %v282_v15  ;;  %744 = vmatpush3.msra.mxu1 %v377_v18  ;;  %v638_v60 = vld [vmem:[%s1251_s6] ss:$0 sm:$0xff] }
  0x26   : > { %712 = vmatprep.subr.mxu0 %v902_v1  ;;  %745 = vmatprep.subr.mxu1 %v902_v1 }
  0x27   : > { %713 = vmatpush3.msra.mxu0 %v281_v17  ;;  %746 = vmatpush3.msra.mxu1 %v376_v20 }
  0x28   : > { %714 = vmatprep.subr.mxu0 %v902_v1  ;;  %747 = vmatprep.subr.mxu1 %v902_v1 }
  0x29   : > { %715 = vmatpush3.msra.mxu0 %v280_v19  ;;  %748 = vmatpush3.msra.mxu1 %v375_v22 }
  0x2a   : > { %716 = vmatprep.subr.mxu0 %v902_v1  ;;  %749 = vmatprep.subr.mxu1 %v902_v1 }
  0x2b   : > { %717 = vmatpush3.msra.mxu0 %v279_v21  ;;  %750 = vmatpush3.msra.mxu1 %v374_v24 }
  0x2c   : > { %718 = vmatprep.subr.mxu0 %v902_v1  ;;  %751 = vmatprep.subr.mxu1 %v902_v1 }
  0x2d   : > { %719 = vmatpush3.msra.mxu0 %v278_v23  ;;  %752 = vmatpush3.msra.mxu1 %v373_v26 }
  0x2e   : > { %720 = vmatprep.subr.mxu0 %v902_v1  ;;  %753 = vmatprep.subr.mxu1 %v902_v1 }
  0x2f   : > { %721 = vmatpush3.msra.mxu0 %v277_v25  ;;  %754 = vmatpush3.msra.mxu1 %v372_v28 }
  0x30   : > { %722 = vmatprep.subr.mxu0 %v902_v1  ;;  %755 = vmatprep.subr.mxu1 %v902_v1 }
  0x31   : > { %723 = vmatpush3.msra.mxu0 %v276_v27  ;;  %756 = vmatpush3.msra.mxu1 %v371_v31 }
  0x32   : > { %724 = vmatprep.subr.mxu0 %v902_v1  ;;  %757 = vmatprep.subr.mxu1 %v902_v1 }
  0x33   : > { %725 = vmatpush3.msra.mxu0 %v275_v29  ;;  %758 = vmatpush3.msra.mxu1 %v370_v32 }
  0x34   : > { %727 = vmatmul.mubr.f32.vlgmr.msra.gmra.mxu0 %v274_v30  ;;  %764 = vmatprep.subr.mxu0 %v902_v1 }
  0x35   : > { %796 = vmatprep.mubr.msk.f32.mxu0 %vm903_vm0, %v902_v1  ;;  %759 = vmatprep.subr.mxu1 %v902_v1 }
  0x36   : > { %760 = vmatpush3.msra.mxu1 %v369_v33  ;;  %765 = vmatpush3.msra.mxu0 %v478_v34 }
  0x37   : > { %766 = vmatprep.subr.mxu0 %v902_v1 }
  0x38   : > { %767 = vmatpush3.msra.mxu0 %v477_v35 }
  0x39   : > { %768 = vmatprep.subr.mxu0 %v902_v1 }
  0x3a   : > { %769 = vmatpush3.msra.mxu0 %v476_v36 }
  0x3b   : > { %770 = vmatprep.subr.mxu0 %v902_v1 }
  0x3c   : > { %771 = vmatpush3.msra.mxu0 %v475_v37 }
  0x3d   : > { %772 = vmatprep.subr.mxu0 %v902_v1 }
  0x3e   : > { %773 = vmatpush3.msra.mxu0 %v474_v38 }
  0x3f   : > { %774 = vmatprep.subr.mxu0 %v902_v1 }
  0x40   : > { %775 = vmatpush3.msra.mxu0 %v473_v39 }
  0x41   : > { %776 = vmatprep.subr.mxu0 %v902_v1 }
  0x42   : > { %777 = vmatpush3.msra.mxu0 %v472_v40 }
  0x43   : > { %778 = vmatprep.subr.mxu0 %v902_v1 }
  0x44   : > { %779 = vmatpush3.msra.mxu0 %v471_v41 }
  0x45   : > { %780 = vmatprep.subr.mxu0 %v902_v1 }
  0x46   : > { %781 = vmatpush3.msra.mxu0 %v470_v42 }
  0x47   : > { %782 = vmatprep.subr.mxu0 %v902_v1 }
  0x48   : > { %783 = vmatpush3.msra.mxu0 %v469_v43 }
  0x49   : > { %784 = vmatprep.subr.mxu0 %v902_v1 }
  0x4a   : > { %785 = vmatpush3.msra.mxu0 %v468_v44 }
  0x4b   : > { %786 = vmatprep.subr.mxu0 %v902_v1 }
  0x4c   : > { %787 = vmatpush3.msra.mxu0 %v467_v45 }
  0x4d   : > { %788 = vmatprep.subr.mxu0 %v902_v1 }
  0x4e   : > { %789 = vmatpush3.msra.mxu0 %v466_v46 }
  0x4f   : > { %790 = vmatprep.subr.mxu0 %v902_v1 }
  0x50   : > { %791 = vmatpush3.msra.mxu0 %v465_v52 }
  0x51   : > { %792 = vmatprep.subr.mxu0 %v902_v1 }
  0x52   : > { %793 = vmatpush3.msra.mxu0 %v464_v53 }
  0x53   : > { %794 = vmatprep.subr.mxu0 %v902_v1 }
  0x54   : > { %795 = vmatpush3.msra.mxu0 %v463_v54 }
  0xf4   : > { %v364_v48 = vpop.f32.mrf.mxu0 }
  0xf5   : > { %v365_v49 = vadd.f32 %v636_v47, %v364_v48 }
  0xf6   : > { %v728_v50 = vpop.f32.mrf.mxu0 }
  0xf7   : > { %v368_v51 = vmax.f32 %v365_v49, 0.0 }
  0xf9   : > { %762 = vmatmul.mubr.f32.vlgmr.msra.gmra.mxu1 %v368_v51 }
 0x1b9   : > { %v458_v56 = vpop.f32.mrf.mxu1 }
 0x1ba   : > { %v459_v57 = vadd.f32 %v637_v55, %v458_v56 }
 0x1bb   : > { %v763_v58 = vpop.f32.mrf.mxu1 }
 0x1bc   : > { %v462_v59 = vmax.f32 %v459_v57, 0.0 }
 0x1be   : > { %797 = vmatmul.mubr.f32.vlgmr.msra.gmra.mxu0 %v462_v59 }
 0x27e   : > { %v552_v61 = vpop.f32.mrf.mxu0 }
 0x27f   : > { %v553_v62 = vadd.f32 %v638_v60, %v552_v61 }
 0x280   : > { %v798_v63 = vpop.f32.mrf.mxu0 }
 0x281   : > { %556 = vst [vmem:[%s269_s9] sm:$0xff] %v553_v62 }
 0x282   : > { %853 = shalt.err (!%p850_p3)
}
 0x283   : > { %s854_s21 = scalar_lea.hbm %s1210_s15, 128  ;;  %s858_s23 = scalar_lea.hbm %s1252_s7, 256 }
 0x284   : > { %p855_p4 = scmp.ne.s32.totalorder %s1210_s15, %s854_s21  ;;  %p859_p9 = scmp.lt.s32.totalorder %s1210_s15, %s1252_s7 }
 0x285   : > { %p860_p10 = scmp.lt.s32.totalorder %s858_s23, %s854_s21 }
 0x286   : > { %p856_p7 = pnand %p855_p4, %p983_p5 }
 0x287   : > { %p861_p11 = por %p860_p10, %p859_p9 }
 0x288   : > { %p857_p8 = pneg %p856_p7 }
 0x28a   : > { %p862_p12 = pnand %p861_p11, %p857_p8 }
 0x28c   : > { %865 = shalt.err (!%p862_p12)
}
 0x28d   : > { %799 = dma.vmem_to_hbm [thread:$0]  (%p983_p5), %s572_s13, 128, %s1210_s15, %s558_s16  }
 0x28e PF: > { %p805_p13 = scmp.ge.s32.totalorder %s900_s27, 2  ;;  %s583_s8 = sand.u32 1, %s888_s24  }
 0x28f   : > { %s584_s14 = scalar_lea.sflag [#allocation3], %s583_s8 }
 0x290   : > { %p802_p0 = pnand %p805_p13, %p987_p6 }
 0x292   : > { %p803_p1 = pneg %p802_p0 }
 0x294   : > { %883 = dma.done.wait (%p803_p1), %s584_s14, 128  }
 0x295   : > { %885 = vsyncadd (%p803_p1), %s584_s14, 4294967168  ;;  %p17_p2 = scmp.ge.s32.totalorder %s970_s30, 4   ;;  %s1255_s24 = smov %s892_s25 }
 0x296   : > { %s1256_s25 = smov %s896_s26  ;;  %s1257_s26 = smov %s981_s10 }
 0x297   : > { %s1258_s27 = smov %s970_s30  ;;  %19 = sbr.rel (!%p17_p2) target bundleno = 3 (0x3), region = 83 }
 0x29c   :  { %589 = vsyncpa [#allocation3], 1 }
 0x29d   :  { %591 = vsyncpa [#allocation3 + $0x1], 1 }

</bundles_post_ra>
